<compile_context>
chip_gen: v6e
topology: v6e:2x2x1
jax: 0.10.0
libtpu: 0.0.40
codegen_flags: <defaults>
</compile_context>

<pallas_src>
import functools

import jax
import jax.numpy as jnp
from jax.experimental import pallas as pl
from jax.experimental.pallas import tpu as pltpu


# ---------------------------------------------------------------------------
# Helpers
# ---------------------------------------------------------------------------
def _round_up(x, m):
    return ((x + m - 1) // m) * m


def _node_padding(n):
    """Padded node count (lane/sublane friendly, tiles divide evenly)."""
    if n <= 128:
        return 128
    return _round_up(n, 256)


def _tpu_vmem_capacity():
    """Physical VMEM bytes per core (fallback: v7x-sized 64 MiB)."""
    try:
        return int(pltpu.get_tpu_info().vmem_capacity_bytes)
    except Exception:
        return 64 * 1024 * 1024


def _tiles(n_pad, vmem_cap):
    """(tm, tk) row / reduction tiles."""
    tk = min(256, n_pad)
    if n_pad <= 128:
        tm = 64          # >= 2 row blocks so v7x's two TensorCores both work
    elif n_pad <= 256:
        tm = 128
    elif vmem_cap >= 100 * 1024 * 1024 and n_pad % 512 == 0:
        tm = 512         # bigger row tile on 128 MiB VMEM parts (v5e/v6e)
    else:
        tm = 256
    return tm, tk


def _const_spec_kwargs(single_buffer):
    """pipeline_mode=Buffered(1) for constant-index operands (no 2nd buffer)."""
    if single_buffer and hasattr(pl, "Buffered"):
        return {"pipeline_mode": pl.Buffered(1)}
    return {}


# ---------------------------------------------------------------------------
# Pallas kernel: one GNN layer.
#   Grid (row_blocks, k_blocks) — adjacency reduction axis (k) last.
#   fuse_w=False:  out = act( acc_k[ A_ik @ HW_k ] + b )         (HW hoisted)
#   fuse_w=True :  out = act( (acc_k[ A_ik @ H_k ]) @ W + b )    (W in finalize)
# ---------------------------------------------------------------------------
def _gnn_layer_kernel(a_ref, rhs_ref, *rest, fuse_w, apply_act,
                      resident_rhs, tk):
    if fuse_w:
        w_ref, b_ref, o_ref, acc_ref = rest
    else:
        b_ref, o_ref, acc_ref = rest

    k = pl.program_id(1)
    nk = pl.num_programs(1)

    @pl.when(k == 0)
    def _():
        acc_ref[...] = jnp.zeros_like(acc_ref)

    if resident_rhs:
        # Whole H / HW lives in VMEM; slice the k-slab out of the resident ref.
        start = pl.multiple_of(k * tk, tk)
        rhs = rhs_ref[pl.ds(start, tk), :]
    else:
        rhs = rhs_ref[...]

    # Single MXU op per grid step, f32 accumulation (no per-step casts).
    acc_ref[...] += jnp.dot(a_ref[...], rhs, preferred_element_type=jnp.float32)

    @pl.when(k == nk - 1)
    def _():
        res = acc_ref[...]
        if fuse_w:
            # one bf16 cast + one W matmul per OUTPUT TILE (not per k-step)
            res = jnp.dot(res.astype(jnp.bfloat16), w_ref[...],
                          preferred_element_type=jnp.float32)
        res = res + b_ref[...]
        if apply_act:                      # static branch, baked at trace time
            res = jnp.maximum(res, 0.0)
        o_ref[...] = res.astype(o_ref.dtype)


def gnn_layer(a, h, w, b, *, apply_act, out_dtype, vmem_cap,
              force_stream=False):
    """One GNN layer:  act(A @ H @ W + b)  as a tiled pallas_call.

    a: [N_pad, N_pad] bf16   row-normalized adjacency (self-loops, padded)
    h: [N_pad, F_in]  bf16   node features (128-padded feature dim)
    w: [F_in, F_out]  bf16   weights (128-padded)
    b: [1, F_out]     f32    bias
    """
    n_pad = a.shape[0]
    f_in = h.shape[1]
    f_out = w.shape[1]
    tm, tk = _tiles(n_pad, vmem_cap)
    grid = (n_pad // tm, n_pad // tk)
    vmem_limit = (3 * vmem_cap) // 4

    # Matmul-order decision (on padded dims, which set the real FLOP count).
    fuse_w = f_in < f_out
    if fuse_w:
        rhs = h                                  # accumulate A @ H, W at end
        f_rhs, acc_cols = f_in, f_in
    else:
        # Hoist the feature transform: HW computed ONCE by XLA (f32 acc).
        rhs = jnp.dot(h, w,
                      preferred_element_type=jnp.float32).astype(jnp.bfloat16)
        f_rhs, acc_cols = f_out, f_out

    rhs_bytes = n_pad * f_rhs * jnp.dtype(rhs.dtype).itemsize
    resident_rhs = (not force_stream) and (rhs_bytes <= vmem_cap // 4)

    kernel = functools.partial(
        _gnn_layer_kernel,
        fuse_w=fuse_w, apply_act=apply_act,
        resident_rhs=resident_rhs, tk=tk,
    )

    def _run(single_buffer):
        const = _const_spec_kwargs(single_buffer)

        in_specs = [pl.BlockSpec((tm, tk), lambda i, k: (i, k))]   # A tile
        if resident_rhs:
            in_specs.append(pl.BlockSpec((n_pad, f_rhs),
                                         lambda i, k: (0, 0), **const))
        else:
            in_specs.append(pl.BlockSpec((tk, f_rhs), lambda i, k: (k, 0)))
        if fuse_w:
            in_specs.append(pl.BlockSpec((f_in, f_out),
                                         lambda i, k: (0, 0), **const))
        in_specs.append(pl.BlockSpec((1, f_out),
                                     lambda i, k: (0, 0), **const))

        operands = (a, rhs, w, b) if fuse_w else (a, rhs, b)

        return pl.pallas_call(
            kernel,
            out_shape=jax.ShapeDtypeStruct((n_pad, f_out), out_dtype),
            grid=grid,
            in_specs=in_specs,
            out_specs=pl.BlockSpec((tm, f_out), lambda i, k: (i, 0)),
            scratch_shapes=[pltpu.VMEM((tm, acc_cols), jnp.float32)],
            compiler_params=pltpu.CompilerParams(
                dimension_semantics=("parallel", "arbitrary"),
                vmem_limit_bytes=vmem_limit,
            ),
        )(*operands)

    try:
        return _run(True)
    except Exception:
        # Fallback: if single-buffering (pl.Buffered(1)) is rejected by this
        # jax/Mosaic version, retry with default double-buffering.
        return _run(False)


# ---------------------------------------------------------------------------
# BaseGNN in JAX: parameter setup + forward chaining the Pallas layers.
# ---------------------------------------------------------------------------
class BaseGNN:
    def __init__(self, input_dim, hidden_dim, output_dim, num_layers, key):
        self.input_dim = input_dim
        self.hidden_dim = hidden_dim
        self.output_dim = output_dim
        self.num_layers = num_layers
        self.vmem_cap = _tpu_vmem_capacity()
        self.force_stream = False   # test hook: force the streamed-RHS path

        dims = [input_dim] + [hidden_dim] * (num_layers - 1) + [output_dim]
        dims_pad = [_round_up(max(d, 1), 128) for d in dims]
        self.dims_pad = dims_pad

        self.params = []
        for l in range(num_layers):
            key, wk, bk = jax.random.split(key, 3)
            fan_in, fan_out = dims[l], dims[l + 1]
            scale = jnp.sqrt(2.0 / (fan_in + fan_out)).astype(jnp.float32)
            w = jax.random.normal(wk, (fan_in, fan_out), jnp.float32) * scale
            bias = jax.random.normal(bk, (1, fan_out), jnp.float32) * 0.01
            # zero-pad to lane-dense 128-multiples (padding stays zero through
            # the stack: zero W rows/cols, zero bias cols, ReLU(0) = 0)
            w_pad = jnp.zeros((dims_pad[l], dims_pad[l + 1]), jnp.float32)
            w_pad = w_pad.at[:fan_in, :fan_out].set(w)
            b_pad = jnp.zeros((1, dims_pad[l + 1]), jnp.float32)
            b_pad = b_pad.at[:, :fan_out].set(bias)
            self.params.append((w_pad.astype(jnp.bfloat16), b_pad))

    @staticmethod
    def _normalized_adjacency(edge_index, n, n_pad):
        """Dense row-normalized adjacency with self-loops, built directly at
        the padded size (single f32 N_pad x N_pad buffer).

        Duplicate edges deduplicated (.set); self-loops added only if absent
        (jnp.maximum with a diagonal restricted to real nodes); padded rows
        stay all-zero."""
        src, dst = edge_index[0], edge_index[1]
        adj = jnp.zeros((n_pad, n_pad), jnp.float32)
        adj = adj.at[dst, src].set(1.0)                   # messages src -> dst
        diag = jnp.where(jnp.arange(n_pad) < n, 1.0, 0.0)
        adj = jnp.maximum(adj, jnp.diag(diag))
        deg = jnp.sum(adj, axis=1, keepdims=True)
        return (adj / jnp.maximum(deg, 1.0)).astype(jnp.bfloat16)

    def forward(self, x, edge_index):
        n = x.shape[0]
        n_pad = _node_padding(n)

        a = self._normalized_adjacency(edge_index, n, n_pad)

        f_in_pad = self.dims_pad[0]
        h = jnp.zeros((n_pad, f_in_pad), jnp.float32)
        h = h.at[:n, :self.input_dim].set(x.astype(jnp.float32))
        h = h.astype(jnp.bfloat16)

        for l, (w, b) in enumerate(self.params):
            last = l == self.num_layers - 1
            h = gnn_layer(
                a, h, w, b,
                apply_act=not last,
                out_dtype=jnp.float32 if last else jnp.bfloat16,
                vmem_cap=self.vmem_cap,
                force_stream=self.force_stream,
            )

        # strip node / feature padding
        return h[:n, :self.output_dim]

    __call__ = forward


def _reference_forward(model, x, edge_index):
    """Pure-JAX f32 reference using the same (bf16-quantized) parameters."""
    n = x.shape[0]
    n_pad = _node_padding(n)
    a = model._normalized_adjacency(edge_index, n, n_pad).astype(jnp.float32)
    h = jnp.zeros((n_pad, model.dims_pad[0]), jnp.float32)
    h = h.at[:n, :model.input_dim].set(x.astype(jnp.float32))
    for l, (w, b) in enumerate(model.params):
        h = a @ h @ w.astype(jnp.float32) + b
        if l != model.num_layers - 1:
            h = jnp.maximum(h, 0.0)
    return h[:n, :model.output_dim]


# ---------------------------------------------------------------------------
# Demo
# ---------------------------------------------------------------------------
if __name__ == "__main__":
    key = jax.random.PRNGKey(0)
    k_x, k_e, k_p = jax.random.split(key, 3)

    num_nodes = 16
    input_dim = 8      # pads to 128
    hidden_dim = 160   # pads to 256 -> exercises the fuse_w (A@H then W) path
    output_dim = 4     # pads to 128 -> exercises the hoisted-HW path
    num_layers = 3
    num_edges = 48

    # node features [N, F_in]
    x = jax.random.normal(k_x, (num_nodes, input_dim), jnp.float32)
    # edge_index [2, E] in COO format (int32 node indices)
    edge_index = jax.random.randint(k_e, (2, num_edges), 0, num_nodes, jnp.int32)

    model = BaseGNN(input_dim, hidden_dim, output_dim, num_layers, k_p)

    out = jax.block_until_ready(model(x, edge_index))
    assert out.shape == (num_nodes, output_dim)
    assert out.dtype == jnp.float32
    assert bool(jnp.all(jnp.isfinite(out)))

    # Also exercise the streamed-RHS code path and check it agrees.
    model.force_stream = True
    out_stream = jax.block_until_ready(model(x, edge_index))
    model.force_stream = False
    assert bool(jnp.allclose(out, out_stream, atol=1e-2, rtol=1e-2))

    # Check against a pure-JAX f32 reference (bf16 storage -> loose tolerance).
    ref = _reference_forward(model, x, edge_index)
    assert bool(jnp.allclose(out, ref, atol=7e-2, rtol=7e-2))

    print("KERNEL_OK")
</pallas_src>

<mosaic_0001>
module attributes {stable_mosaic.version = 11 : i64} {
  func.func @_gnn_layer_kernel(%arg0: i32, %arg1: i32, %arg2: memref<64x128xbf16, #tpu.memory_space<vmem>>, %arg3: memref<128x128xbf16, #tpu.memory_space<vmem>>, %arg4: memref<128x256xbf16, #tpu.memory_space<vmem>>, %arg5: memref<1x256xf32, #tpu.memory_space<vmem>>, %arg6: memref<64x256xbf16, #tpu.memory_space<vmem>>, %arg7: memref<64x128xf32, #tpu.memory_space<vmem>>) attributes {dimension_semantics = [#tpu.dimension_semantics<parallel>, #tpu.dimension_semantics<arbitrary>], iteration_bounds = array<i64: 2, 1>, scalar_prefetch = 0 : i64, scratch_operands = 1 : i64, tpu.core_type = #tpu.core_type<tc>, window_params = [{transform_indices = @transform_0, window_bounds = array<i64: 64, 128>}, {pipeline_mode = #tpu.pipeline_mode<synchronous>, transform_indices = @transform_1, window_bounds = array<i64: 128, 128>}, {pipeline_mode = #tpu.pipeline_mode<synchronous>, transform_indices = @transform_2, window_bounds = array<i64: 128, 256>}, {pipeline_mode = #tpu.pipeline_mode<synchronous>, transform_indices = @transform_3, window_bounds = array<i64: 1, 256>}, {transform_indices = @transform_4, window_bounds = array<i64: 64, 256>}]} {
    %c0_i32 = arith.constant 0 : i32
    %0 = arith.cmpi eq, %arg1, %c0_i32 : i32
    %1 = arith.extui %0 : i1 to i32
    %c0_i32_0 = arith.constant 0 : i32
    %2 = arith.cmpi ne, %1, %c0_i32_0 : i32
    scf.if %2 {
      %cst_9 = arith.constant 0.000000e+00 : f32
      %15 = vector.broadcast %cst_9 : f32 to vector<64x128xf32>
      %c0_10 = arith.constant 0 : index
      %c0_11 = arith.constant 0 : index
      %16 = vector.load %arg7[%c0_10, %c0_11] : memref<64x128xf32, #tpu.memory_space<vmem>>, vector<64x128xf32>
      tpu.vector_store %arg7[%c0_10, %c0_11], %15 {strides = array<i32>} : memref<64x128xf32, #tpu.memory_space<vmem>>, vector<64x128xf32>,
    } else {
    }
    %c128_i32 = arith.constant 128 : i32
    %3 = arith.muli %arg1, %c128_i32 : i32
    %4 = tpu.assume_multiple %3, 128 : i32
    %5 = arith.index_cast %4 : i32 to index
    %c0 = arith.constant 0 : index
    %6 = vector.load %arg3[%5, %c0] : memref<128x128xbf16, #tpu.memory_space<vmem>>, vector<128x128xbf16>
    %c0_1 = arith.constant 0 : index
    %c0_2 = arith.constant 0 : index
    %7 = vector.load %arg7[%c0_1, %c0_2] : memref<64x128xf32, #tpu.memory_space<vmem>>, vector<64x128xf32>
    %c0_3 = arith.constant 0 : index
    %c0_4 = arith.constant 0 : index
    %8 = vector.load %arg2[%c0_3, %c0_4] : memref<64x128xbf16, #tpu.memory_space<vmem>>, vector<64x128xbf16>
    %cst = arith.constant dense<0.000000e+00> : vector<64x128xf32>
    %9 = tpu.matmul %8, %6, %cst {dimension_numbers = #tpu.dot_dimension_numbers<[1], [0], [0], [1], [0, 0, 1, 1], [], []>} : vector<64x128xbf16>, vector<128x128xbf16>, vector<64x128xf32> -> vector<64x128xf32>
    %10 = arith.addf %7, %9 : vector<64x128xf32>
    %c0_5 = arith.constant 0 : index
    %c0_6 = arith.constant 0 : index
    %11 = vector.load %arg7[%c0_5, %c0_6] : memref<64x128xf32, #tpu.memory_space<vmem>>, vector<64x128xf32>
    tpu.vector_store %arg7[%c0_5, %c0_6], %10 {strides = array<i32>} : memref<64x128xf32, #tpu.memory_space<vmem>>, vector<64x128xf32>,
    %c0_i32_7 = arith.constant 0 : i32
    %12 = arith.cmpi eq, %arg1, %c0_i32_7 : i32
    %13 = arith.extui %12 : i1 to i32
    %c0_i32_8 = arith.constant 0 : i32
    %14 = arith.cmpi ne, %13, %c0_i32_8 : i32
    scf.if %14 {
      %c0_9 = arith.constant 0 : index
      %c0_10 = arith.constant 0 : index
      %15 = vector.load %arg7[%c0_9, %c0_10] : memref<64x128xf32, #tpu.memory_space<vmem>>, vector<64x128xf32>
      %16 = arith.truncf %15 : vector<64x128xf32> to vector<64x128xbf16>
      %c0_11 = arith.constant 0 : index
      %c0_12 = arith.constant 0 : index
      %17 = vector.load %arg4[%c0_11, %c0_12] : memref<128x256xbf16, #tpu.memory_space<vmem>>, vector<128x256xbf16>
      %cst_13 = arith.constant dense<0.000000e+00> : vector<64x256xf32>
      %18 = tpu.matmul %16, %17, %cst_13 {dimension_numbers = #tpu.dot_dimension_numbers<[1], [0], [0], [1], [0, 0, 1, 1], [], []>} : vector<64x128xbf16>, vector<128x256xbf16>, vector<64x256xf32> -> vector<64x256xf32>
      %c0_14 = arith.constant 0 : index
      %c0_15 = arith.constant 0 : index
      %19 = vector.load %arg5[%c0_14, %c0_15] : memref<1x256xf32, #tpu.memory_space<vmem>>, vector<1x256xf32>
      %20 = vector.broadcast %19 : vector<1x256xf32> to vector<64x256xf32>
      %21 = arith.addf %18, %20 : vector<64x256xf32>
      %cst_16 = arith.constant 0.000000e+00 : f32
      %22 = vector.broadcast %cst_16 : f32 to vector<64x256xf32>
      %23 = arith.maximumf %21, %22 : vector<64x256xf32>
      %24 = arith.truncf %23 : vector<64x256xf32> to vector<64x256xbf16>
      %c0_17 = arith.constant 0 : index
      %c0_18 = arith.constant 0 : index
      %25 = vector.load %arg6[%c0_17, %c0_18] : memref<64x256xbf16, #tpu.memory_space<vmem>>, vector<64x256xbf16>
      tpu.vector_store %arg6[%c0_17, %c0_18], %24 {strides = array<i32>} : memref<64x256xbf16, #tpu.memory_space<vmem>>, vector<64x256xbf16>,
    } else {
    }
    return
  }
  func.func @transform_0(%arg0: i32, %arg1: i32) -> (i32, i32) {
    %c0_i32 = arith.constant 0 : i32
    return %arg0, %arg1 : i32, i32
  }
  func.func @transform_1(%arg0: i32, %arg1: i32) -> (i32, i32) {
    %c0_i32 = arith.constant 0 : i32
    %c0_i32_0 = arith.constant 0 : i32
    %c0_i32_1 = arith.constant 0 : i32
    return %c0_i32, %c0_i32_0 : i32, i32
  }
  func.func @transform_2(%arg0: i32, %arg1: i32) -> (i32, i32) {
    %c0_i32 = arith.constant 0 : i32
    %c0_i32_0 = arith.constant 0 : i32
    %c0_i32_1 = arith.constant 0 : i32
    return %c0_i32, %c0_i32_0 : i32, i32
  }
  func.func @transform_3(%arg0: i32, %arg1: i32) -> (i32, i32) {
    %c0_i32 = arith.constant 0 : i32
    %c0_i32_0 = arith.constant 0 : i32
    %c0_i32_1 = arith.constant 0 : i32
    return %c0_i32, %c0_i32_0 : i32, i32
  }
  func.func @transform_4(%arg0: i32, %arg1: i32) -> (i32, i32) {
    %c0_i32 = arith.constant 0 : i32
    %c0_i32_0 = arith.constant 0 : i32
    return %arg0, %c0_i32 : i32, i32
  }
}

module attributes {stable_mosaic.version = 11 : i64} {
  func.func @_gnn_layer_kernel(%arg0: i32, %arg1: i32, %arg2: memref<64x128xbf16, #tpu.memory_space<vmem>>, %arg3: memref<128x128xbf16, #tpu.memory_space<vmem>>, %arg4: memref<128x256xbf16, #tpu.memory_space<vmem>>, %arg5: memref<1x256xf32, #tpu.memory_space<vmem>>, %arg6: memref<64x256xbf16, #tpu.memory_space<vmem>>, %arg7: memref<64x128xf32, #tpu.memory_space<vmem>>) attributes {dimension_semantics = [#tpu.dimension_semantics<parallel>, #tpu.dimension_semantics<arbitrary>], iteration_bounds = array<i64: 2, 1>, scalar_prefetch = 0 : i64, scratch_operands = 1 : i64, tpu.core_type = #tpu.core_type<tc>, window_params = [{transform_indices = @transform_0, window_bounds = array<i64: 64, 128>}, {pipeline_mode = #tpu.pipeline_mode<synchronous>, transform_indices = @transform_1, window_bounds = array<i64: 128, 128>}, {pipeline_mode = #tpu.pipeline_mode<synchronous>, transform_indices = @transform_2, window_bounds = array<i64: 128, 256>}, {pipeline_mode = #tpu.pipeline_mode<synchronous>, transform_indices = @transform_3, window_bounds = array<i64: 1, 256>}, {transform_indices = @transform_4, window_bounds = array<i64: 64, 256>}]} {
    %c0_i32 = arith.constant 0 : i32
    %0 = arith.cmpi eq, %arg1, %c0_i32 : i32
    %1 = arith.extui %0 : i1 to i32
    %c0_i32_0 = arith.constant 0 : i32
    %2 = arith.cmpi ne, %1, %c0_i32_0 : i32
    scf.if %2 {
      %cst_9 = arith.constant 0.000000e+00 : f32
      %15 = vector.broadcast %cst_9 : f32 to vector<64x128xf32>
      %c0_10 = arith.constant 0 : index
      %c0_11 = arith.constant 0 : index
      %16 = vector.load %arg7[%c0_10, %c0_11] : memref<64x128xf32, #tpu.memory_space<vmem>>, vector<64x128xf32>
      tpu.vector_store %arg7[%c0_10, %c0_11], %15 {strides = array<i32>} : memref<64x128xf32, #tpu.memory_space<vmem>>, vector<64x128xf32>,
    } else {
    }
    %c128_i32 = arith.constant 128 : i32
    %3 = arith.muli %arg1, %c128_i32 : i32
    %4 = tpu.assume_multiple %3, 128 : i32
    %5 = arith.index_cast %4 : i32 to index
    %c0 = arith.constant 0 : index
    %6 = vector.load %arg3[%5, %c0] : memref<128x128xbf16, #tpu.memory_space<vmem>>, vector<128x128xbf16>
    %c0_1 = arith.constant 0 : index
    %c0_2 = arith.constant 0 : index
    %7 = vector.load %arg7[%c0_1, %c0_2] : memref<64x128xf32, #tpu.memory_space<vmem>>, vector<64x128xf32>
    %c0_3 = arith.constant 0 : index
    %c0_4 = arith.constant 0 : index
    %8 = vector.load %arg2[%c0_3, %c0_4] : memref<64x128xbf16, #tpu.memory_space<vmem>>, vector<64x128xbf16>
    %cst = arith.constant dense<0.000000e+00> : vector<64x128xf32>
    %9 = tpu.matmul %8, %6, %cst {dimension_numbers = #tpu.dot_dimension_numbers<[1], [0], [0], [1], [0, 0, 1, 1], [], []>} : vector<64x128xbf16>, vector<128x128xbf16>, vector<64x128xf32> -> vector<64x128xf32>
    %10 = arith.addf %7, %9 : vector<64x128xf32>
    %c0_5 = arith.constant 0 : index
    %c0_6 = arith.constant 0 : index
    %11 = vector.load %arg7[%c0_5, %c0_6] : memref<64x128xf32, #tpu.memory_space<vmem>>, vector<64x128xf32>
    tpu.vector_store %arg7[%c0_5, %c0_6], %10 {strides = array<i32>} : memref<64x128xf32, #tpu.memory_space<vmem>>, vector<64x128xf32>,
    %c0_i32_7 = arith.constant 0 : i32
    %12 = arith.cmpi eq, %arg1, %c0_i32_7 : i32
    %13 = arith.extui %12 : i1 to i32
    %c0_i32_8 = arith.constant 0 : i32
    %14 = arith.cmpi ne, %13, %c0_i32_8 : i32
    scf.if %14 {
      %c0_9 = arith.constant 0 : index
      %c0_10 = arith.constant 0 : index
      %15 = vector.load %arg7[%c0_9, %c0_10] : memref<64x128xf32, #tpu.memory_space<vmem>>, vector<64x128xf32>
      %16 = arith.truncf %15 : vector<64x128xf32> to vector<64x128xbf16>
      %c0_11 = arith.constant 0 : index
      %c0_12 = arith.constant 0 : index
      %17 = vector.load %arg4[%c0_11, %c0_12] : memref<128x256xbf16, #tpu.memory_space<vmem>>, vector<128x256xbf16>
      %cst_13 = arith.constant dense<0.000000e+00> : vector<64x256xf32>
      %18 = tpu.matmul %16, %17, %cst_13 {dimension_numbers = #tpu.dot_dimension_numbers<[1], [0], [0], [1], [0, 0, 1, 1], [], []>} : vector<64x128xbf16>, vector<128x256xbf16>, vector<64x256xf32> -> vector<64x256xf32>
      %c0_14 = arith.constant 0 : index
      %c0_15 = arith.constant 0 : index
      %19 = vector.load %arg5[%c0_14, %c0_15] : memref<1x256xf32, #tpu.memory_space<vmem>>, vector<1x256xf32>
      %20 = vector.broadcast %19 : vector<1x256xf32> to vector<64x256xf32>
      %21 = arith.addf %18, %20 : vector<64x256xf32>
      %cst_16 = arith.constant 0.000000e+00 : f32
      %22 = vector.broadcast %cst_16 : f32 to vector<64x256xf32>
      %23 = arith.maximumf %21, %22 : vector<64x256xf32>
      %24 = arith.truncf %23 : vector<64x256xf32> to vector<64x256xbf16>
      %c0_17 = arith.constant 0 : index
      %c0_18 = arith.constant 0 : index
      %25 = vector.load %arg6[%c0_17, %c0_18] : memref<64x256xbf16, #tpu.memory_space<vmem>>, vector<64x256xbf16>
      tpu.vector_store %arg6[%c0_17, %c0_18], %24 {strides = array<i32>} : memref<64x256xbf16, #tpu.memory_space<vmem>>, vector<64x256xbf16>,
    } else {
    }
    return
  }
  func.func @transform_0(%arg0: i32, %arg1: i32) -> (i32, i32) {
    %c0_i32 = arith.constant 0 : i32
    return %arg0, %arg1 : i32, i32
  }
  func.func @transform_1(%arg0: i32, %arg1: i32) -> (i32, i32) {
    %c0_i32 = arith.constant 0 : i32
    %c0_i32_0 = arith.constant 0 : i32
    %c0_i32_1 = arith.constant 0 : i32
    return %c0_i32, %c0_i32_0 : i32, i32
  }
  func.func @transform_2(%arg0: i32, %arg1: i32) -> (i32, i32) {
    %c0_i32 = arith.constant 0 : i32
    %c0_i32_0 = arith.constant 0 : i32
    %c0_i32_1 = arith.constant 0 : i32
    return %c0_i32, %c0_i32_0 : i32, i32
  }
  func.func @transform_3(%arg0: i32, %arg1: i32) -> (i32, i32) {
    %c0_i32 = arith.constant 0 : i32
    %c0_i32_0 = arith.constant 0 : i32
    %c0_i32_1 = arith.constant 0 : i32
    return %c0_i32, %c0_i32_0 : i32, i32
  }
  func.func @transform_4(%arg0: i32, %arg1: i32) -> (i32, i32) {
    %c0_i32 = arith.constant 0 : i32
    %c0_i32_0 = arith.constant 0 : i32
    return %arg0, %c0_i32 : i32, i32
  }
}

</mosaic_0001>

<bundles_post_ra>
// kernel: tpu_custom_call.1
= control target key start
LH: loop header
LB: loop body
LE: loop exit
PB: predicated region body
PF: predicated region fallthrough
CT: control target
= control target key end

     0   :  { %9 = vsyncpa [#allocation4], 0  ;;  %s1498_s0 = inlined_call_operand.hbm [shape: bf16[128,128], index: 0, kind: input, shape index: {}]   ;;  %s1499_s1 = inlined_call_operand.hbm [shape: bf16[128,128], index: 1, kind: input, shape index: {}]   ;;  %s1500_s2 = inlined_call_operand.hbm [shape: bf16[128,256], index: 2, kind: input, shape index: {}]   ;;  %s1501_s3 = inlined_call_operand.vmem [shape: f32[1,256], index: 3, kind: input, shape index: {}]   ;;  %s1502_s4 = inlined_call_operand.hbm [shape: bf16[128,256], index: 4, kind: output, shape index: {}]  }
   0x1   :  { %11 = vsyncpa [#allocation4 + $0x1], 0 }
   0x2   :  { %12 = vsyncpa [#allocation7], 0 }
   0x3   :  { %13 = vsyncpa [#allocation5], 0 }
   0x4   :  { %15 = vsyncpa [#allocation5 + $0x1], 0  ;;  %s1283_s15 = smov 0   ;;  %s1285_s16 = smov 0  }
   0x5   :  { %s1287_s17 = smov 0   ;;  %s1289_s18 = smov 0  }
   0x6   :  { %s1291_s19 = smov 0   ;;  %s1293_s20 = smov 0  }
   0x7 LB: > { %s852_s21 = sadd.s32 4294967295, %s1245_s20   ;;  %s853_s22 = sadd.s32 4294967294, %s1245_s20   ;;  %s1245_s20 = sphi %s1293_s20, %s21_s20   ;;  %s1241_s19 = sphi %s1291_s19, %s1521_s19   ;;  %s1237_s18 = sphi %s1289_s18, %s1520_s18   ;;  %s1233_s17 = sphi %s1287_s17, %s1519_s17   ;;  %s1229_s16 = sphi %s1285_s16, %s1518_s16   ;;  %s1225_s15 = sphi %s1283_s15, %s1517_s15  }
   0x8   : > { %p55_p0 = scmp.ne.s32.totalorder %s1229_s16, %s1225_s15  ;;  %p1317_p1 = scmp.eq.s32.totalorder %s852_s21, 0 }
   0x9   : > { %p1321_p2 = scmp.eq.s32.totalorder %s852_s21, 1  ;;  %p148_p3 = scmp.eq.s32.totalorder %s853_s22, 1 }
   0xa   : > { %p1327_p4 = por %p1317_p1, %p55_p0  ;;  %p854_p5 = scmp.ge.s32.totalorder %s1245_s20, 1 }
   0xb   : > { %p1332_p6 = por %p148_p3, %p55_p0  ;;  %p155_p7 = scmp.lt.s32.totalorder %s1245_s20, 3 }
   0xc   : > { %s1247_s28 = smov [#allocation6]   ;;  %s1248_s5 = smov [#allocation8]  }
   0xd   : > { %s1508_s26 = scalar_select %p1332_p6, 1, 0 }
   0xe   : > { %p1337_p8 = pnand %p854_p5, %p155_p7  ;;  %s167_s29 = sshll.u32 %s1247_s28, 4  ;;  %s168_s29 = int_to_ptr.vmem [resolvable:$true] %s167_s29 }
   0xf   : > { %s180_s6 = sshll.u32 %s1248_s5, 4  ;;  %s1092_s7 = scalar_lea.vmem %s168_s29, 1024  ;;  %s181_s6 = int_to_ptr.vmem [resolvable:$true] %s180_s6 }
  0x10   : > { %p967_p9 = pneg %p1337_p8  ;;  %p1093_p13 = scmp.ne.s32.totalorder %s168_s29, %s1092_s7 }
  0x11   : > { %p1100_p5 = scmp.lt.s32.totalorder %s168_s29, %s168_s29  ;;  %p1101_p7 = scmp.lt.s32.totalorder %s1092_s7, %s1092_s7 }
  0x12   : > { %p1346_p11 = pnand %p967_p9, %p1317_p1 }
  0x13   : > { %p1102_p10 = por %p1101_p7, %p1100_p5 }
  0x14   : > { %p1083_p12 = pneg %p1346_p11 }
  0x16   : > { %p1095_p0 = pnand %p1093_p13, %p1083_p12 }
  0x18   : > { %p1096_p3 = pneg %p1095_p0 }
  0x1a   : > { %p1103_p9 = pnand %p1102_p10, %p1096_p3 }
  0x1c   : > { %1106 = shalt.err (!%p1103_p9)
}
  0x1d   : > { %s1503_s8 = smov 64   ;;  %s1504_s9 = smov 4  }
  0x1e   : > { %970 = dma.hbm_to_vmem [thread:$0]  (!%p1346_p11), %s1499_s1, 1024, %s168_s29, [#allocation7], %s1503_s8, %s1503_s8, %s1504_s9  }
  0x1f   : > { %s1118_s12 = scalar_lea.vmem %s181_s6, 2048  ;;  %p1126_p10 = scmp.lt.s32.totalorder %s181_s6, %s181_s6 }
  0x20   : > { %p1119_p13 = scmp.ne.s32.totalorder %s181_s6, %s1118_s12  ;;  %p1127_p3 = scmp.lt.s32.totalorder %s1118_s12, %s1118_s12 }
  0x22   : > { %p1121_p0 = pnand %p1119_p13, %p1083_p12  ;;  %p1128_p7 = por %p1127_p3, %p1126_p10 }
  0x24   : > { %p1122_p5 = pneg %p1121_p0 }
  0x26   : > { %p1129_p9 = pnand %p1128_p7, %p1122_p5 }
  0x28   : > { %1132 = shalt.err (!%p1129_p9)
}
  0x29   : > { %s1251_s13 = smov 128   ;;  %s1252_s14 = smov 8  }
  0x2a   : > { %973 = dma.hbm_to_vmem [thread:$0]  (!%p1346_p11), %s1500_s2, 2048, %s181_s6, [#allocation7], %s1251_s13, %s1251_s13, %s1252_s14  }
  0x2b   : > { %s33_s28 = sadd.s32 1, %s1241_s19  ;;  %s42_s29 = sadd.s32 1, %s1233_s17 }
  0x2c   : > { %p35_p12 = scmp.ge.s32.totalorder %s33_s28, 2  ;;  %p49_p13 = scmp.ne.s32.totalorder %s1233_s17, %s1229_s16 }
  0x2d   : > { %p50_p0 = scmp.eq.s32.totalorder %s1245_s20, 0  ;;  %p984_p5 = scmp.lt.s32.totalorder %s1245_s20, 2 }
  0x2e   : > { %s1523_s28 = smov (%p35_p12, %s33_s28), 0  ;;  %p1381_p3 = por %p1321_p2, %p49_p13 }
  0x2f   : > { %p51_p10 = por %p50_p0, %p49_p13  ;;  %s37_s30 = ssub.s32 %s1241_s19, %s1523_s28 }
  0x30   : > { %s197_s7 = sand.u32 1, %s1233_s17   ;;  %p40_p7 = scmp.eq.s32.totalorder %s37_s30, 0 }
  0x31   : > { %s858_s6 = sshll.u32 %s197_s7, 5  ;;  %s908_s10 = sshll.u32 %s1241_s19, 9 }
  0x32   : > { %s1390_s11 = scalar_select %p40_p7, %s1233_s17, %s42_s29  }
  0x33   : > { %s208_s14 = scalar_lea.hbm %s1498_s0, %s908_s10  ;;  %s201_s21 = scalar_lea.vmem [#allocation3], %s858_s6 }
  0x34   : > { %s209_s22 = sshll.u32 %s201_s21, 4  ;;  %p1397_p11 = pnand %p984_p5, %p51_p10  ;;  %s210_s22 = int_to_ptr.vmem [resolvable:$true] %s209_s22 }
  0x35   : > { %s198_s8 = scalar_lea.sflag [#allocation4], %s197_s7  ;;  %s1146_s30 = scalar_lea.vmem %s210_s22, 512 }
  0x36   : > { %p1135_p2 = pneg %p1397_p11  ;;  %p1147_p9 = scmp.ne.s32.totalorder %s210_s22, %s1146_s30 }
  0x37   : > { %s1253_s29 = smov [#allocation3]  }
  0x38   : > { %p1149_p12 = pnand %p1147_p9, %p1135_p2  ;;  %s1151_s9 = sshll.u32 %s1253_s29, 4  ;;  %s1152_s9 = int_to_ptr.vmem [resolvable:$false] %s1151_s9 }
  0x39   : > { %s1153_s10 = scalar_lea.vmem %s1152_s9, 1024  ;;  %p1154_p0 = scmp.lt.s32.totalorder %s210_s22, %s1152_s9 }
  0x3a   : > { %p1150_p13 = pneg %p1149_p12  ;;  %p1155_p7 = scmp.lt.s32.totalorder %s1153_s10, %s1146_s30 }
  0x3c   : > { %p1156_p6 = por %p1155_p7, %p1154_p0 }
  0x3e   : > { %p1157_p5 = pnand %p1156_p6, %p1150_p13 }
  0x40   : > { %1160 = shalt.err (!%p1157_p5)
}
  0x41   : > { %s1513_s6 = smov 4   ;;  %s1514_s12 = smov 64  }
  0x42   : > { %977 = dma.hbm_to_vmem [thread:$0]  (!%p1397_p11), %s208_s14, 512, %s210_s22, %s198_s8, %s1514_s12, %s1514_s12, %s1513_s6  }
  0x43   : > { %221 = sbr.rel (%p1337_p8) target bundleno = 552 (0x228), region = 36  ;;  %s1411_s7 = sand.u32 (!%p1337_p8), 1, %s1229_s16  }
  0x44   : > { %s862_s9 = sshll.u32 (!%p1337_p8), %s1411_s7, 5  ;;  %s224_s13 = scalar_lea.sflag (!%p1337_p8), [#allocation4], %s1411_s7 }
  0x45   : > { %s1415_s21 = scalar_lea.vmem (!%p1337_p8), [#allocation3], %s862_s9 }
  0x48   : > { %1212 = dma.done.wait (%p1327_p4), %s224_s13, 512  }
  0x49   : > { %1214 = vsyncadd (%p1327_p4), %s224_s13, 4294966784 }
  0x4a   : > { %1216 = dma.done.wait (%p1317_p1), [#allocation7], 3072  }
  0x4b   : > { %1218 = vsyncadd (%p1317_p1), [#allocation7], 4294964224  ;;  %v1045_v0 = vld [vmem:[#allocation6 + $0x38] sm:$0xff]   ;;  %v1046_v1 = vld [vmem:[#allocation6 + $0x30] sm:$0xff]   ;;  %v1254_v28 = vmov 0   ;;  %v498_v41 = vlaneseq  ;;  %s865_s27 = sshll.u32 %s1411_s7, 6 }
  0x4c   : > { %931 = vmatprep.subr.bf16.mxu0 %v1045_v0  ;;  %v1047_v2 = vld [vmem:[#allocation6 + $0x28] sm:$0xff]   ;;  %v1048_v3 = vld [vmem:[#allocation6 + $0x20] sm:$0xff]   ;;  %v1049_v5 = vld [vmem:[#allocation6 + $0x18] sm:$0xff]   ;;  %620 = vmatprep.mubr.bf16.mxu1 %v1254_v28  ;;  %s1433_s8 = scalar_lea.vmem [#allocation9], %s865_s27  ;;  %s918_s22 = sshll.u32 %s1237_s18, 10 }
  0x4d   : > { %932 = vmatpush3.bf16.msra.mxu0 %v1045_v0  ;;  %v1053_v4 = vld [vmem:[%s1415_s21] sm:$0xff]   ;;  %v1057_v6 = vld [vmem:[#allocation8 + $0x74] ss:$8 sps:$4 sm:$0xff]   ;;  %v1059_v7 = vld [vmem:[#allocation8 + $0x70] ss:$8 sps:$4 sm:$0xff]   ;;  %v499_v42 = vshrl.u32 %v498_v41, 7  ;;  %s1449_s29 = scalar_lea.hbm %s1502_s4, %s918_s22 }
  0x4e   : > { %933 = vmatprep.subr.bf16.mxu0 %v1046_v1  ;;  %947 = vmatprep.mubr.bf16.mxu0 %v1053_v4  ;;  %v1060_v8 = vld [vmem:[#allocation8 + $0x64] ss:$8 sps:$4 sm:$0xff]   ;;  %v1050_v9 = vld [vmem:[#allocation6 + $0x10] sm:$0xff]   ;;  %v1062_v10 = vld [vmem:[#allocation8 + $0x60] ss:$8 sps:$4 sm:$0xff]   ;;  %s748_s14 = sshll.u32 %s1433_s8, 4  ;;  %s1443_s14 = int_to_ptr.vmem [resolvable:$true] %s748_s14 }
  0x4f   : > { %588 = vmatprep.subr.bf16.mxu1 %v1057_v6  ;;  %v1063_v11 = vld [vmem:[#allocation8 + $0x54] ss:$8 sps:$4 sm:$0xff]   ;;  %v1051_v12 = vld [vmem:[#allocation6 + $0x8] sm:$0xff]   ;;  %v1065_v13 = vld [vmem:[#allocation8 + $0x50] ss:$8 sps:$4 sm:$0xff]   ;;  %v500_v43 = vsub.s32 0, %v499_v42 }
  0x50   : > { %589 = vmatpush1.bf16.msra.mxu1 %v1059_v7  ;;  %v1066_v14 = vld [vmem:[#allocation8 + $0x44] ss:$8 sps:$4 sm:$0xff]   ;;  %v1068_v15 = vld [vmem:[#allocation8 + $0x40] ss:$8 sps:$4 sm:$0xff]   ;;  %v1069_v17 = vld [vmem:[#allocation8 + $0x34] ss:$8 sps:$4 sm:$0xff]  }
  0x51   : > { %934 = vmatpush3.bf16.msra.mxu0 %v1046_v1  ;;  %590 = vmatprep.subr.bf16.mxu1 %v1060_v8  ;;  %v1052_v16 = vld [vmem:[#allocation6] sm:$0xff]   ;;  %v1071_v18 = vld [vmem:[#allocation8 + $0x30] ss:$8 sps:$4 sm:$0xff]   ;;  %v1054_v20 = vld [vmem:[%s1415_s21 + $0x8] sm:$0xff]   ;;  %v504_v45 = vsub.s32 1, %v499_v42  ;;  %s734_s10 = scalar_lea.sflag [#allocation5], %s1411_s7 }
  0x52   : > { %935 = vmatprep.subr.bf16.mxu0 %v1047_v2  ;;  %v1072_v19 = vld [vmem:[#allocation8 + $0x24] ss:$8 sps:$4 sm:$0xff]   ;;  %v1055_v21 = vld [vmem:[%s1415_s21 + $0x10] sm:$0xff]   ;;  %v1074_v22 = vld [vmem:[#allocation8 + $0x20] ss:$8 sps:$4 sm:$0xff]   ;;  %s1161_s6 = scalar_lea.vmem %s1443_s14, 1024 }
  0x53   : > { %v1056_v23 = vld [vmem:[%s1415_s21 + $0x18] sm:$0xff]   ;;  %v1078_v26 = vld [vmem:[#allocation8 + $0x4] ss:$8 sps:$4 sm:$0xff]   ;;  %v1080_v27 = vld [vmem:[#allocation8] ss:$8 sps:$4 sm:$0xff]   ;;  %p1162_p1 = scmp.ne.s32.totalorder %s1443_s14, %s1161_s6  ;;  %s1255_s18 = smov [#allocation9]  }
  0x54   : > { %591 = vmatpush1.bf16.msra.mxu1 %v1062_v10  ;;  %v1075_v24 = vld [vmem:[#allocation8 + $0x14] ss:$8 sps:$4 sm:$0xff]   ;;  %v1077_v25 = vld [vmem:[#allocation8 + $0x10] ss:$8 sps:$4 sm:$0xff]   ;;  %v496_v44 = vld [vmem:[%s1501_s3] sm:$0x3] }
  0x55   : > { %936 = vmatpush3.bf16.msra.mxu0 %v1047_v2  ;;  %592 = vmatprep.subr.bf16.mxu1 %v1063_v11  ;;  %v501_v46 = vrot.slane %v496_v44, %v500_v43  ;;  %v505_v47 = vrot.slane %v496_v44, %v504_v45  ;;  %p1163_p4 = pnand %p1162_p1, %p1381_p3  ;;  %s1165_s12 = sshll.u32 %s1255_s18, 4  ;;  %s1166_s12 = int_to_ptr.vmem [resolvable:$false] %s1165_s12 }
  0x56   : > { %937 = vmatprep.subr.bf16.mxu0 %v1048_v3  ;;  %s1167_s9 = scalar_lea.vmem %s1166_s12, 2048  ;;  %p1168_p8 = scmp.lt.s32.totalorder %s1443_s14, %s1166_s12 }
  0x57   : > { %p1164_p6 = pneg %p1163_p4  ;;  %p1169_p10 = scmp.lt.s32.totalorder %s1167_s9, %s1161_s6 }
  0x58   : > { %593 = vmatpush1.bf16.msra.mxu1 %v1065_v13 }
  0x59   : > { %938 = vmatpush3.bf16.msra.mxu0 %v1048_v3  ;;  %594 = vmatprep.subr.bf16.mxu1 %v1066_v14  ;;  %p1170_p11 = por %p1169_p10, %p1168_p8 }
  0x5a   : > { %939 = vmatprep.subr.bf16.mxu0 %v1049_v5 }
  0x5b   : > { %p1171_p2 = pnand %p1170_p11, %p1164_p6 }
  0x5c   : > { %595 = vmatpush1.bf16.msra.mxu1 %v1068_v15 }
  0x5d   : > { %940 = vmatpush3.bf16.msra.mxu0 %v1049_v5  ;;  %596 = vmatprep.subr.bf16.mxu1 %v1069_v17 }
  0x5e   : > { %941 = vmatprep.subr.bf16.mxu0 %v1050_v9 }
  0x60   : > { %597 = vmatpush1.bf16.msra.mxu1 %v1071_v18 }
  0x61   : > { %942 = vmatpush3.bf16.msra.mxu0 %v1050_v9  ;;  %598 = vmatprep.subr.bf16.mxu1 %v1072_v19 }
  0x62   : > { %943 = vmatprep.subr.bf16.mxu0 %v1051_v12 }
  0x64   : > { %599 = vmatpush1.bf16.msra.mxu1 %v1074_v22 }
  0x65   : > { %944 = vmatpush3.bf16.msra.mxu0 %v1051_v12  ;;  %600 = vmatprep.subr.bf16.mxu1 %v1075_v24 }
  0x66   : > { %945 = vmatprep.subr.bf16.mxu0 %v1052_v16 }
  0x68   : > { %601 = vmatpush1.bf16.msra.mxu1 %v1077_v25 }
  0x69   : > { %946 = vmatpush3.bf16.msra.mxu0 %v1052_v16  ;;  %602 = vmatprep.subr.bf16.mxu1 %v1078_v26 }
  0x6c   : > { %948 = vmatmul.mubr.bf16.vlgmr.msra.gmra.mxu0 %v1054_v20  ;;  %603 = vmatpush1.bf16.msra.mxu1 %v1080_v27 }
  0x6d   : > { %951 = vmatprep.mubr.bf16.mxu0 %v1055_v21 }
  0x74   : > { %952 = vmatmul.mubr.bf16.gmra.mxu0 %v1056_v23 }
 0x12c   : > { %v949_v29 = vpop.f32.mrf.mxu0 }
 0x12e   : > { %v418_v30 = vpop.f32.mrf.mxu0 }
 0x130   : > { %v950_v31 = vpop.f32.mrf.mxu0 }
 0x131   : > { %v477_v36 = vpack.c.bf16 %v950_v31, %v949_v29 }
 0x132   : > { %v421_v32 = vpop.f32.mrf.mxu0 }
 0x133   : > { %v476_v33 = vpack.c.bf16 %v421_v32, %v418_v30 }
 0x134   : > { %v953_v34 = vpop.f32.mrf.mxu0 }
 0x135   : > { %621 = vmatmul.mubr.bf16.vlgmr.msra.gmra.mxu1 %v476_v33 }
 0x136   : > { %630 = vmatprep.mubr.bf16.mxu1 %v1254_v28  ;;  %v434_v35 = vpop.f32.mrf.mxu0 }
 0x138   : > { %v954_v37 = vpop.f32.mrf.mxu0 }
 0x139   : > { %v479_v40 = vpack.c.bf16 %v954_v37, %v953_v34 }
 0x13a   : > { %v437_v38 = vpop.f32.mrf.mxu0 }
 0x13b   : > { %v478_v39 = vpack.c.bf16 %v437_v38, %v434_v35 }
 0x13d   : > { %631 = vmatmul.mubr.bf16.gmra.mxu1 %v477_v36 }
 0x13e   : > { %640 = vmatprep.mubr.bf16.mxu1 %v1254_v28 }
 0x145   : > { %641 = vmatmul.mubr.bf16.gmra.mxu1 %v478_v39 }
 0x146   : > { %650 = vmatprep.mubr.bf16.mxu1 %v1254_v28 }
 0x14d   : > { %651 = vmatmul.mubr.bf16.gmra.mxu1 %v479_v40 }
 0x1f5   : > { %v622_v48 = vpop.f32.mrf.mxu1 }
 0x1f6   : > { %v623_v49 = vadd.f32 %v622_v48, %v501_v46 }
 0x1f7   : > { %v624_v50 = vpop.f32.mrf.mxu1 }
 0x1f8   : > { %v625_v51 = vadd.f32 %v624_v50, %v505_v47  ;;  %v661_v53 = vmax.f32 %v623_v49, 0.0 }
 0x1f9   : > { %v626_v52 = vpop.f32.mrf.mxu1 }
 0x1fa   : > { %v662_v54 = vmax.f32 %v625_v51, 0.0  ;;  %v627_v55 = vadd.f32 %v626_v52, %v501_v46 }
 0x1fb   : > { %v628_v56 = vpop.f32.mrf.mxu1 }
 0x1fc   : > { %v909_v57 = vpack.c.bf16 %v662_v54, %v661_v53  ;;  %v629_v58 = vadd.f32 %v628_v56, %v505_v47  ;;  %v663_v60 = vmax.f32 %v627_v55, 0.0 }
 0x1fd   : > { %v632_v59 = vpop.f32.mrf.mxu1 }
 0x1fe   : > { %725 = vst [vmem:[%s1433_s8] sm:$0xff] %v909_v57  ;;  %v664_v61 = vmax.f32 %v629_v58, 0.0  ;;  %v633_v62 = vadd.f32 %v632_v59, %v501_v46 }
 0x1ff   : > { %v634_v63 = vpop.f32.mrf.mxu1 }
 0x200   : > { %v910_v0 = vpack.c.bf16 %v664_v61, %v663_v60  ;;  %v635_v1 = vadd.f32 %v634_v63, %v505_v47  ;;  %v665_v3 = vmax.f32 %v633_v62, 0.0 }
 0x201   : > { %v636_v2 = vpop.f32.mrf.mxu1 }
 0x202   : > { %726 = vst [vmem:[%s1433_s8 + $0x8] sm:$0xff] %v910_v0  ;;  %v666_v4 = vmax.f32 %v635_v1, 0.0  ;;  %v637_v5 = vadd.f32 %v636_v2, %v501_v46 }
 0x203   : > { %v638_v6 = vpop.f32.mrf.mxu1 }
 0x204   : > { %v911_v7 = vpack.c.bf16 %v666_v4, %v665_v3  ;;  %v639_v8 = vadd.f32 %v638_v6, %v505_v47  ;;  %v667_v10 = vmax.f32 %v637_v5, 0.0 }
 0x205   : > { %v642_v9 = vpop.f32.mrf.mxu1 }
 0x206   : > { %727 = vst [vmem:[%s1433_s8 + $0x10] sm:$0xff] %v911_v7  ;;  %v668_v11 = vmax.f32 %v639_v8, 0.0  ;;  %v643_v12 = vadd.f32 %v642_v9, %v501_v46 }
 0x207   : > { %v644_v13 = vpop.f32.mrf.mxu1 }
 0x208   : > { %v912_v14 = vpack.c.bf16 %v668_v11, %v667_v10  ;;  %v645_v15 = vadd.f32 %v644_v13, %v505_v47  ;;  %v669_v17 = vmax.f32 %v643_v12, 0.0 }
 0x209   : > { %v646_v16 = vpop.f32.mrf.mxu1 }
 0x20a   : > { %728 = vst [vmem:[%s1433_s8 + $0x18] sm:$0xff] %v912_v14  ;;  %v670_v18 = vmax.f32 %v645_v15, 0.0  ;;  %v647_v19 = vadd.f32 %v646_v16, %v501_v46 }
 0x20b   : > { %v648_v20 = vpop.f32.mrf.mxu1 }
 0x20c   : > { %v913_v21 = vpack.c.bf16 %v670_v18, %v669_v17  ;;  %v649_v22 = vadd.f32 %v648_v20, %v505_v47  ;;  %v671_v24 = vmax.f32 %v647_v19, 0.0 }
 0x20d   : > { %v652_v23 = vpop.f32.mrf.mxu1 }
 0x20e   : > { %729 = vst [vmem:[%s1433_s8 + $0x20] sm:$0xff] %v913_v21  ;;  %v672_v25 = vmax.f32 %v649_v22, 0.0  ;;  %v653_v26 = vadd.f32 %v652_v23, %v501_v46 }
 0x20f   : > { %v654_v27 = vpop.f32.mrf.mxu1 }
 0x210   : > { %v914_v28 = vpack.c.bf16 %v672_v25, %v671_v24  ;;  %v655_v29 = vadd.f32 %v654_v27, %v505_v47  ;;  %v673_v31 = vmax.f32 %v653_v26, 0.0 }
 0x211   : > { %v656_v30 = vpop.f32.mrf.mxu1 }
 0x212   : > { %730 = vst [vmem:[%s1433_s8 + $0x28] sm:$0xff] %v914_v28  ;;  %v674_v32 = vmax.f32 %v655_v29, 0.0  ;;  %v657_v33 = vadd.f32 %v656_v30, %v501_v46 }
 0x213   : > { %v658_v34 = vpop.f32.mrf.mxu1 }
 0x214   : > { %v915_v35 = vpack.c.bf16 %v674_v32, %v673_v31  ;;  %v659_v36 = vadd.f32 %v658_v34, %v505_v47  ;;  %v675_v37 = vmax.f32 %v657_v33, 0.0 }
 0x216   : > { %731 = vst [vmem:[%s1433_s8 + $0x30] sm:$0xff] %v915_v35  ;;  %v676_v38 = vmax.f32 %v659_v36, 0.0 }
 0x218   : > { %v916_v39 = vpack.c.bf16 %v676_v38, %v675_v37 }
 0x21a   : > { %732 = vst [vmem:[%s1433_s8 + $0x38] sm:$0xff] %v916_v39 }
 0x21b   : > { %1174 = shalt.err (!%p1171_p2)
}
 0x21c   : > { %s1175_s13 = scalar_lea.hbm %s1449_s29, 1024  ;;  %s1179_s25 = scalar_lea.hbm %s1502_s4, 2048 }
 0x21d   : > { %p1176_p9 = scmp.ne.s32.totalorder %s1449_s29, %s1175_s13  ;;  %p1180_p0 = scmp.lt.s32.totalorder %s1449_s29, %s1502_s4 }
 0x21e   : > { %p1181_p7 = scmp.lt.s32.totalorder %s1179_s25, %s1175_s13 }
 0x21f   : > { %p1177_p12 = pnand %p1176_p9, %p1381_p3 }
 0x220   : > { %p1182_p5 = por %p1181_p7, %p1180_p0 }
 0x221   : > { %p1178_p13 = pneg %p1177_p12 }
 0x223   : > { %p1183_p1 = pnand %p1182_p5, %p1178_p13 }
 0x225   : > { %1186 = shalt.err (!%p1183_p1)
}
 0x226   : > { %s1256_s22 = smov 128   ;;  %s1257_s24 = smov 8  }
 0x227   : > { %965 = dma.vmem_to_hbm [thread:$0]  (%p1381_p3), %s1443_s14, 1024, %s1449_s29, %s734_s10, %s1256_s22, %s1256_s22, %s1257_s24  }
 0x228 PF: > { %s763_s30 = sand.u32 1, %s1225_s15   ;;  %p1515_p4 = scmp.ne.s32.totalorder %s1508_s26, 0 }
 0x229   : > { %p1516_p6 = scmp.ge.s32.totalorder %s1245_s20, 2  ;;  %s764_s6 = scalar_lea.sflag [#allocation5], %s763_s30 }
 0x22b   : > { %p979_p8 = pnand %p1516_p6, %p1515_p4 }
 0x22d   : > { %p980_p10 = pneg %p979_p8 }
 0x22f   : > { %1220 = dma.done.wait (%p980_p10), %s764_s6, 1024  }
 0x230   : > { %1222 = vsyncadd (%p980_p10), %s764_s6, 4294966272  ;;  %s21_s20 = sadd.s32 1, %s1245_s20   ;;  %s1517_s15 = smov %s1229_s16 }
 0x231   : > { %p18_p11 = scmp.ge.s32.totalorder %s21_s20, 4   ;;  %s1518_s16 = smov %s1233_s17 }
 0x232   : > { %s1519_s17 = smov %s1390_s11  ;;  %s1520_s18 = smov %s1241_s19 }
 0x233   : > { %s1521_s19 = smov %s1523_s28  ;;  %20 = sbr.rel (!%p18_p11) target bundleno = 7 (0x7), region = 98 }
 0x238   :  { %769 = vsyncpa [#allocation4], 1 }
 0x239   :  { %771 = vsyncpa [#allocation4 + $0x1], 1 }
 0x23a   :  { %772 = vsyncpa [#allocation7], 1 }
 0x23b   :  { %773 = vsyncpa [#allocation5], 1 }
 0x23c   :  { %775 = vsyncpa [#allocation5 + $0x1], 1 }

// kernel: tpu_custom_call.1
= control target key start
LH: loop header
LB: loop body
LE: loop exit
PB: predicated region body
PF: predicated region fallthrough
CT: control target
= control target key end

     0   :  { %9 = vsyncpa [#allocation4], 0  ;;  %s1498_s0 = inlined_call_operand.hbm [shape: bf16[128,128], index: 0, kind: input, shape index: {}]   ;;  %s1499_s1 = inlined_call_operand.hbm [shape: bf16[128,128], index: 1, kind: input, shape index: {}]   ;;  %s1500_s2 = inlined_call_operand.hbm [shape: bf16[128,256], index: 2, kind: input, shape index: {}]   ;;  %s1501_s3 = inlined_call_operand.vmem [shape: f32[1,256], index: 3, kind: input, shape index: {}]   ;;  %s1502_s4 = inlined_call_operand.hbm [shape: bf16[128,256], index: 4, kind: output, shape index: {}]  }
   0x1   :  { %11 = vsyncpa [#allocation4 + $0x1], 0 }
   0x2   :  { %12 = vsyncpa [#allocation7], 0 }
   0x3   :  { %13 = vsyncpa [#allocation5], 0 }
   0x4   :  { %15 = vsyncpa [#allocation5 + $0x1], 0  ;;  %s1283_s15 = smov 0   ;;  %s1285_s16 = smov 0  }
   0x5   :  { %s1287_s17 = smov 0   ;;  %s1289_s18 = smov 0  }
   0x6   :  { %s1291_s19 = smov 0   ;;  %s1293_s20 = smov 0  }
   0x7 LB: > { %s852_s21 = sadd.s32 4294967295, %s1245_s20   ;;  %s853_s22 = sadd.s32 4294967294, %s1245_s20   ;;  %s1245_s20 = sphi %s1293_s20, %s21_s20   ;;  %s1241_s19 = sphi %s1291_s19, %s1521_s19   ;;  %s1237_s18 = sphi %s1289_s18, %s1520_s18   ;;  %s1233_s17 = sphi %s1287_s17, %s1519_s17   ;;  %s1229_s16 = sphi %s1285_s16, %s1518_s16   ;;  %s1225_s15 = sphi %s1283_s15, %s1517_s15  }
   0x8   : > { %p55_p0 = scmp.ne.s32.totalorder %s1229_s16, %s1225_s15  ;;  %p1317_p1 = scmp.eq.s32.totalorder %s852_s21, 0 }
   0x9   : > { %p1321_p2 = scmp.eq.s32.totalorder %s852_s21, 1  ;;  %p148_p3 = scmp.eq.s32.totalorder %s853_s22, 1 }
   0xa   : > { %p1327_p4 = por %p1317_p1, %p55_p0  ;;  %p854_p5 = scmp.ge.s32.totalorder %s1245_s20, 1 }
   0xb   : > { %p1332_p6 = por %p148_p3, %p55_p0  ;;  %p155_p7 = scmp.lt.s32.totalorder %s1245_s20, 3 }
   0xc   : > { %s1247_s28 = smov [#allocation6]   ;;  %s1248_s5 = smov [#allocation8]  }
   0xd   : > { %s1508_s26 = scalar_select %p1332_p6, 1, 0 }
   0xe   : > { %p1337_p8 = pnand %p854_p5, %p155_p7  ;;  %s167_s29 = sshll.u32 %s1247_s28, 4  ;;  %s168_s29 = int_to_ptr.vmem [resolvable:$true] %s167_s29 }
   0xf   : > { %s180_s6 = sshll.u32 %s1248_s5, 4  ;;  %s1092_s7 = scalar_lea.vmem %s168_s29, 1024  ;;  %s181_s6 = int_to_ptr.vmem [resolvable:$true] %s180_s6 }
  0x10   : > { %p967_p9 = pneg %p1337_p8  ;;  %p1093_p13 = scmp.ne.s32.totalorder %s168_s29, %s1092_s7 }
  0x11   : > { %p1100_p5 = scmp.lt.s32.totalorder %s168_s29, %s168_s29  ;;  %p1101_p7 = scmp.lt.s32.totalorder %s1092_s7, %s1092_s7 }
  0x12   : > { %p1346_p11 = pnand %p967_p9, %p1317_p1 }
  0x13   : > { %p1102_p10 = por %p1101_p7, %p1100_p5 }
  0x14   : > { %p1083_p12 = pneg %p1346_p11 }
  0x16   : > { %p1095_p0 = pnand %p1093_p13, %p1083_p12 }
  0x18   : > { %p1096_p3 = pneg %p1095_p0 }
  0x1a   : > { %p1103_p9 = pnand %p1102_p10, %p1096_p3 }
  0x1c   : > { %1106 = shalt.err (!%p1103_p9)
}
  0x1d   : > { %s1503_s8 = smov 64   ;;  %s1504_s9 = smov 4  }
  0x1e   : > { %970 = dma.hbm_to_vmem [thread:$0]  (!%p1346_p11), %s1499_s1, 1024, %s168_s29, [#allocation7], %s1503_s8, %s1503_s8, %s1504_s9  }
  0x1f   : > { %s1118_s12 = scalar_lea.vmem %s181_s6, 2048  ;;  %p1126_p10 = scmp.lt.s32.totalorder %s181_s6, %s181_s6 }
  0x20   : > { %p1119_p13 = scmp.ne.s32.totalorder %s181_s6, %s1118_s12  ;;  %p1127_p3 = scmp.lt.s32.totalorder %s1118_s12, %s1118_s12 }
  0x22   : > { %p1121_p0 = pnand %p1119_p13, %p1083_p12  ;;  %p1128_p7 = por %p1127_p3, %p1126_p10 }
  0x24   : > { %p1122_p5 = pneg %p1121_p0 }
  0x26   : > { %p1129_p9 = pnand %p1128_p7, %p1122_p5 }
  0x28   : > { %1132 = shalt.err (!%p1129_p9)
}
  0x29   : > { %s1251_s13 = smov 128   ;;  %s1252_s14 = smov 8  }
  0x2a   : > { %973 = dma.hbm_to_vmem [thread:$0]  (!%p1346_p11), %s1500_s2, 2048, %s181_s6, [#allocation7], %s1251_s13, %s1251_s13, %s1252_s14  }
  0x2b   : > { %s33_s28 = sadd.s32 1, %s1241_s19  ;;  %s42_s29 = sadd.s32 1, %s1233_s17 }
  0x2c   : > { %p35_p12 = scmp.ge.s32.totalorder %s33_s28, 2  ;;  %p49_p13 = scmp.ne.s32.totalorder %s1233_s17, %s1229_s16 }
  0x2d   : > { %p50_p0 = scmp.eq.s32.totalorder %s1245_s20, 0  ;;  %p984_p5 = scmp.lt.s32.totalorder %s1245_s20, 2 }
  0x2e   : > { %s1523_s28 = smov (%p35_p12, %s33_s28), 0  ;;  %p1381_p3 = por %p1321_p2, %p49_p13 }
  0x2f   : > { %p51_p10 = por %p50_p0, %p49_p13  ;;  %s37_s30 = ssub.s32 %s1241_s19, %s1523_s28 }
  0x30   : > { %s197_s7 = sand.u32 1, %s1233_s17   ;;  %p40_p7 = scmp.eq.s32.totalorder %s37_s30, 0 }
  0x31   : > { %s858_s6 = sshll.u32 %s197_s7, 5  ;;  %s908_s10 = sshll.u32 %s1241_s19, 9 }
  0x32   : > { %s1390_s11 = scalar_select %p40_p7, %s1233_s17, %s42_s29  }
  0x33   : > { %s208_s14 = scalar_lea.hbm %s1498_s0, %s908_s10  ;;  %s201_s21 = scalar_lea.vmem [#allocation3], %s858_s6 }
  0x34   : > { %s209_s22 = sshll.u32 %s201_s21, 4  ;;  %p1397_p11 = pnand %p984_p5, %p51_p10  ;;  %s210_s22 = int_to_ptr.vmem [resolvable:$true] %s209_s22 }
  0x35   : > { %s198_s8 = scalar_lea.sflag [#allocation4], %s197_s7  ;;  %s1146_s30 = scalar_lea.vmem %s210_s22, 512 }
  0x36   : > { %p1135_p2 = pneg %p1397_p11  ;;  %p1147_p9 = scmp.ne.s32.totalorder %s210_s22, %s1146_s30 }
  0x37   : > { %s1253_s29 = smov [#allocation3]  }
  0x38   : > { %p1149_p12 = pnand %p1147_p9, %p1135_p2  ;;  %s1151_s9 = sshll.u32 %s1253_s29, 4  ;;  %s1152_s9 = int_to_ptr.vmem [resolvable:$false] %s1151_s9 }
  0x39   : > { %s1153_s10 = scalar_lea.vmem %s1152_s9, 1024  ;;  %p1154_p0 = scmp.lt.s32.totalorder %s210_s22, %s1152_s9 }
  0x3a   : > { %p1150_p13 = pneg %p1149_p12  ;;  %p1155_p7 = scmp.lt.s32.totalorder %s1153_s10, %s1146_s30 }
  0x3c   : > { %p1156_p6 = por %p1155_p7, %p1154_p0 }
  0x3e   : > { %p1157_p5 = pnand %p1156_p6, %p1150_p13 }
  0x40   : > { %1160 = shalt.err (!%p1157_p5)
}
  0x41   : > { %s1513_s6 = smov 4   ;;  %s1514_s12 = smov 64  }
  0x42   : > { %977 = dma.hbm_to_vmem [thread:$0]  (!%p1397_p11), %s208_s14, 512, %s210_s22, %s198_s8, %s1514_s12, %s1514_s12, %s1513_s6  }
  0x43   : > { %221 = sbr.rel (%p1337_p8) target bundleno = 552 (0x228), region = 36  ;;  %s1411_s7 = sand.u32 (!%p1337_p8), 1, %s1229_s16  }
  0x44   : > { %s862_s9 = sshll.u32 (!%p1337_p8), %s1411_s7, 5  ;;  %s224_s13 = scalar_lea.sflag (!%p1337_p8), [#allocation4], %s1411_s7 }
  0x45   : > { %s1415_s21 = scalar_lea.vmem (!%p1337_p8), [#allocation3], %s862_s9 }
  0x48   : > { %1212 = dma.done.wait (%p1327_p4), %s224_s13, 512  }
  0x49   : > { %1214 = vsyncadd (%p1327_p4), %s224_s13, 4294966784 }
  0x4a   : > { %1216 = dma.done.wait (%p1317_p1), [#allocation7], 3072  }
  0x4b   : > { %1218 = vsyncadd (%p1317_p1), [#allocation7], 4294964224  ;;  %v1045_v0 = vld [vmem:[#allocation6 + $0x38] sm:$0xff]   ;;  %v1046_v1 = vld [vmem:[#allocation6 + $0x30] sm:$0xff]   ;;  %v1254_v28 = vmov 0   ;;  %v498_v41 = vlaneseq  ;;  %s865_s27 = sshll.u32 %s1411_s7, 6 }
  0x4c   : > { %931 = vmatprep.subr.bf16.mxu0 %v1045_v0  ;;  %v1047_v2 = vld [vmem:[#allocation6 + $0x28] sm:$0xff]   ;;  %v1048_v3 = vld [vmem:[#allocation6 + $0x20] sm:$0xff]   ;;  %v1049_v5 = vld [vmem:[#allocation6 + $0x18] sm:$0xff]   ;;  %620 = vmatprep.mubr.bf16.mxu1 %v1254_v28  ;;  %s1433_s8 = scalar_lea.vmem [#allocation9], %s865_s27  ;;  %s918_s22 = sshll.u32 %s1237_s18, 10 }
  0x4d   : > { %932 = vmatpush3.bf16.msra.mxu0 %v1045_v0  ;;  %v1053_v4 = vld [vmem:[%s1415_s21] sm:$0xff]   ;;  %v1057_v6 = vld [vmem:[#allocation8 + $0x74] ss:$8 sps:$4 sm:$0xff]   ;;  %v1059_v7 = vld [vmem:[#allocation8 + $0x70] ss:$8 sps:$4 sm:$0xff]   ;;  %v499_v42 = vshrl.u32 %v498_v41, 7  ;;  %s1449_s29 = scalar_lea.hbm %s1502_s4, %s918_s22 }
  0x4e   : > { %933 = vmatprep.subr.bf16.mxu0 %v1046_v1  ;;  %947 = vmatprep.mubr.bf16.mxu0 %v1053_v4  ;;  %v1060_v8 = vld [vmem:[#allocation8 + $0x64] ss:$8 sps:$4 sm:$0xff]   ;;  %v1050_v9 = vld [vmem:[#allocation6 + $0x10] sm:$0xff]   ;;  %v1062_v10 = vld [vmem:[#allocation8 + $0x60] ss:$8 sps:$4 sm:$0xff]   ;;  %s748_s14 = sshll.u32 %s1433_s8, 4  ;;  %s1443_s14 = int_to_ptr.vmem [resolvable:$true] %s748_s14 }
  0x4f   : > { %588 = vmatprep.subr.bf16.mxu1 %v1057_v6  ;;  %v1063_v11 = vld [vmem:[#allocation8 + $0x54] ss:$8 sps:$4 sm:$0xff]   ;;  %v1051_v12 = vld [vmem:[#allocation6 + $0x8] sm:$0xff]   ;;  %v1065_v13 = vld [vmem:[#allocation8 + $0x50] ss:$8 sps:$4 sm:$0xff]   ;;  %v500_v43 = vsub.s32 0, %v499_v42 }
  0x50   : > { %589 = vmatpush1.bf16.msra.mxu1 %v1059_v7  ;;  %v1066_v14 = vld [vmem:[#allocation8 + $0x44] ss:$8 sps:$4 sm:$0xff]   ;;  %v1068_v15 = vld [vmem:[#allocation8 + $0x40] ss:$8 sps:$4 sm:$0xff]   ;;  %v1069_v17 = vld [vmem:[#allocation8 + $0x34] ss:$8 sps:$4 sm:$0xff]  }
  0x51   : > { %934 = vmatpush3.bf16.msra.mxu0 %v1046_v1  ;;  %590 = vmatprep.subr.bf16.mxu1 %v1060_v8  ;;  %v1052_v16 = vld [vmem:[#allocation6] sm:$0xff]   ;;  %v1071_v18 = vld [vmem:[#allocation8 + $0x30] ss:$8 sps:$4 sm:$0xff]   ;;  %v1054_v20 = vld [vmem:[%s1415_s21 + $0x8] sm:$0xff]   ;;  %v504_v45 = vsub.s32 1, %v499_v42  ;;  %s734_s10 = scalar_lea.sflag [#allocation5], %s1411_s7 }
  0x52   : > { %935 = vmatprep.subr.bf16.mxu0 %v1047_v2  ;;  %v1072_v19 = vld [vmem:[#allocation8 + $0x24] ss:$8 sps:$4 sm:$0xff]   ;;  %v1055_v21 = vld [vmem:[%s1415_s21 + $0x10] sm:$0xff]   ;;  %v1074_v22 = vld [vmem:[#allocation8 + $0x20] ss:$8 sps:$4 sm:$0xff]   ;;  %s1161_s6 = scalar_lea.vmem %s1443_s14, 1024 }
  0x53   : > { %v1056_v23 = vld [vmem:[%s1415_s21 + $0x18] sm:$0xff]   ;;  %v1078_v26 = vld [vmem:[#allocation8 + $0x4] ss:$8 sps:$4 sm:$0xff]   ;;  %v1080_v27 = vld [vmem:[#allocation8] ss:$8 sps:$4 sm:$0xff]   ;;  %p1162_p1 = scmp.ne.s32.totalorder %s1443_s14, %s1161_s6  ;;  %s1255_s18 = smov [#allocation9]  }
  0x54   : > { %591 = vmatpush1.bf16.msra.mxu1 %v1062_v10  ;;  %v1075_v24 = vld [vmem:[#allocation8 + $0x14] ss:$8 sps:$4 sm:$0xff]   ;;  %v1077_v25 = vld [vmem:[#allocation8 + $0x10] ss:$8 sps:$4 sm:$0xff]   ;;  %v496_v44 = vld [vmem:[%s1501_s3] sm:$0x3] }
  0x55   : > { %936 = vmatpush3.bf16.msra.mxu0 %v1047_v2  ;;  %592 = vmatprep.subr.bf16.mxu1 %v1063_v11  ;;  %v501_v46 = vrot.slane %v496_v44, %v500_v43  ;;  %v505_v47 = vrot.slane %v496_v44, %v504_v45  ;;  %p1163_p4 = pnand %p1162_p1, %p1381_p3  ;;  %s1165_s12 = sshll.u32 %s1255_s18, 4  ;;  %s1166_s12 = int_to_ptr.vmem [resolvable:$false] %s1165_s12 }
  0x56   : > { %937 = vmatprep.subr.bf16.mxu0 %v1048_v3  ;;  %s1167_s9 = scalar_lea.vmem %s1166_s12, 2048  ;;  %p1168_p8 = scmp.lt.s32.totalorder %s1443_s14, %s1166_s12 }
  0x57   : > { %p1164_p6 = pneg %p1163_p4  ;;  %p1169_p10 = scmp.lt.s32.totalorder %s1167_s9, %s1161_s6 }
  0x58   : > { %593 = vmatpush1.bf16.msra.mxu1 %v1065_v13 }
  0x59   : > { %938 = vmatpush3.bf16.msra.mxu0 %v1048_v3  ;;  %594 = vmatprep.subr.bf16.mxu1 %v1066_v14  ;;  %p1170_p11 = por %p1169_p10, %p1168_p8 }
  0x5a   : > { %939 = vmatprep.subr.bf16.mxu0 %v1049_v5 }
  0x5b   : > { %p1171_p2 = pnand %p1170_p11, %p1164_p6 }
  0x5c   : > { %595 = vmatpush1.bf16.msra.mxu1 %v1068_v15 }
  0x5d   : > { %940 = vmatpush3.bf16.msra.mxu0 %v1049_v5  ;;  %596 = vmatprep.subr.bf16.mxu1 %v1069_v17 }
  0x5e   : > { %941 = vmatprep.subr.bf16.mxu0 %v1050_v9 }
  0x60   : > { %597 = vmatpush1.bf16.msra.mxu1 %v1071_v18 }
  0x61   : > { %942 = vmatpush3.bf16.msra.mxu0 %v1050_v9  ;;  %598 = vmatprep.subr.bf16.mxu1 %v1072_v19 }
  0x62   : > { %943 = vmatprep.subr.bf16.mxu0 %v1051_v12 }
  0x64   : > { %599 = vmatpush1.bf16.msra.mxu1 %v1074_v22 }
  0x65   : > { %944 = vmatpush3.bf16.msra.mxu0 %v1051_v12  ;;  %600 = vmatprep.subr.bf16.mxu1 %v1075_v24 }
  0x66   : > { %945 = vmatprep.subr.bf16.mxu0 %v1052_v16 }
  0x68   : > { %601 = vmatpush1.bf16.msra.mxu1 %v1077_v25 }
  0x69   : > { %946 = vmatpush3.bf16.msra.mxu0 %v1052_v16  ;;  %602 = vmatprep.subr.bf16.mxu1 %v1078_v26 }
  0x6c   : > { %948 = vmatmul.mubr.bf16.vlgmr.msra.gmra.mxu0 %v1054_v20  ;;  %603 = vmatpush1.bf16.msra.mxu1 %v1080_v27 }
  0x6d   : > { %951 = vmatprep.mubr.bf16.mxu0 %v1055_v21 }
  0x74   : > { %952 = vmatmul.mubr.bf16.gmra.mxu0 %v1056_v23 }
 0x12c   : > { %v949_v29 = vpop.f32.mrf.mxu0 }
 0x12e   : > { %v418_v30 = vpop.f32.mrf.mxu0 }
 0x130   : > { %v950_v31 = vpop.f32.mrf.mxu0 }
 0x131   : > { %v477_v36 = vpack.c.bf16 %v950_v31, %v949_v29 }
 0x132   : > { %v421_v32 = vpop.f32.mrf.mxu0 }
 0x133   : > { %v476_v33 = vpack.c.bf16 %v421_v32, %v418_v30 }
 0x134   : > { %v953_v34 = vpop.f32.mrf.mxu0 }
 0x135   : > { %621 = vmatmul.mubr.bf16.vlgmr.msra.gmra.mxu1 %v476_v33 }
 0x136   : > { %630 = vmatprep.mubr.bf16.mxu1 %v1254_v28  ;;  %v434_v35 = vpop.f32.mrf.mxu0 }
 0x138   : > { %v954_v37 = vpop.f32.mrf.mxu0 }
 0x139   : > { %v479_v40 = vpack.c.bf16 %v954_v37, %v953_v34 }
 0x13a   : > { %v437_v38 = vpop.f32.mrf.mxu0 }
 0x13b   : > { %v478_v39 = vpack.c.bf16 %v437_v38, %v434_v35 }
 0x13d   : > { %631 = vmatmul.mubr.bf16.gmra.mxu1 %v477_v36 }
 0x13e   : > { %640 = vmatprep.mubr.bf16.mxu1 %v1254_v28 }
 0x145   : > { %641 = vmatmul.mubr.bf16.gmra.mxu1 %v478_v39 }
 0x146   : > { %650 = vmatprep.mubr.bf16.mxu1 %v1254_v28 }
 0x14d   : > { %651 = vmatmul.mubr.bf16.gmra.mxu1 %v479_v40 }
 0x1f5   : > { %v622_v48 = vpop.f32.mrf.mxu1 }
 0x1f6   : > { %v623_v49 = vadd.f32 %v622_v48, %v501_v46 }
 0x1f7   : > { %v624_v50 = vpop.f32.mrf.mxu1 }
 0x1f8   : > { %v625_v51 = vadd.f32 %v624_v50, %v505_v47  ;;  %v661_v53 = vmax.f32 %v623_v49, 0.0 }
 0x1f9   : > { %v626_v52 = vpop.f32.mrf.mxu1 }
 0x1fa   : > { %v662_v54 = vmax.f32 %v625_v51, 0.0  ;;  %v627_v55 = vadd.f32 %v626_v52, %v501_v46 }
 0x1fb   : > { %v628_v56 = vpop.f32.mrf.mxu1 }
 0x1fc   : > { %v909_v57 = vpack.c.bf16 %v662_v54, %v661_v53  ;;  %v629_v58 = vadd.f32 %v628_v56, %v505_v47  ;;  %v663_v60 = vmax.f32 %v627_v55, 0.0 }
 0x1fd   : > { %v632_v59 = vpop.f32.mrf.mxu1 }
 0x1fe   : > { %725 = vst [vmem:[%s1433_s8] sm:$0xff] %v909_v57  ;;  %v664_v61 = vmax.f32 %v629_v58, 0.0  ;;  %v633_v62 = vadd.f32 %v632_v59, %v501_v46 }
 0x1ff   : > { %v634_v63 = vpop.f32.mrf.mxu1 }
 0x200   : > { %v910_v0 = vpack.c.bf16 %v664_v61, %v663_v60  ;;  %v635_v1 = vadd.f32 %v634_v63, %v505_v47  ;;  %v665_v3 = vmax.f32 %v633_v62, 0.0 }
 0x201   : > { %v636_v2 = vpop.f32.mrf.mxu1 }
 0x202   : > { %726 = vst [vmem:[%s1433_s8 + $0x8] sm:$0xff] %v910_v0  ;;  %v666_v4 = vmax.f32 %v635_v1, 0.0  ;;  %v637_v5 = vadd.f32 %v636_v2, %v501_v46 }
 0x203   : > { %v638_v6 = vpop.f32.mrf.mxu1 }
 0x204   : > { %v911_v7 = vpack.c.bf16 %v666_v4, %v665_v3  ;;  %v639_v8 = vadd.f32 %v638_v6, %v505_v47  ;;  %v667_v10 = vmax.f32 %v637_v5, 0.0 }
 0x205   : > { %v642_v9 = vpop.f32.mrf.mxu1 }
 0x206   : > { %727 = vst [vmem:[%s1433_s8 + $0x10] sm:$0xff] %v911_v7  ;;  %v668_v11 = vmax.f32 %v639_v8, 0.0  ;;  %v643_v12 = vadd.f32 %v642_v9, %v501_v46 }
 0x207   : > { %v644_v13 = vpop.f32.mrf.mxu1 }
 0x208   : > { %v912_v14 = vpack.c.bf16 %v668_v11, %v667_v10  ;;  %v645_v15 = vadd.f32 %v644_v13, %v505_v47  ;;  %v669_v17 = vmax.f32 %v643_v12, 0.0 }
 0x209   : > { %v646_v16 = vpop.f32.mrf.mxu1 }
 0x20a   : > { %728 = vst [vmem:[%s1433_s8 + $0x18] sm:$0xff] %v912_v14  ;;  %v670_v18 = vmax.f32 %v645_v15, 0.0  ;;  %v647_v19 = vadd.f32 %v646_v16, %v501_v46 }
 0x20b   : > { %v648_v20 = vpop.f32.mrf.mxu1 }
 0x20c   : > { %v913_v21 = vpack.c.bf16 %v670_v18, %v669_v17  ;;  %v649_v22 = vadd.f32 %v648_v20, %v505_v47  ;;  %v671_v24 = vmax.f32 %v647_v19, 0.0 }
 0x20d   : > { %v652_v23 = vpop.f32.mrf.mxu1 }
 0x20e   : > { %729 = vst [vmem:[%s1433_s8 + $0x20] sm:$0xff] %v913_v21  ;;  %v672_v25 = vmax.f32 %v649_v22, 0.0  ;;  %v653_v26 = vadd.f32 %v652_v23, %v501_v46 }
 0x20f   : > { %v654_v27 = vpop.f32.mrf.mxu1 }
 0x210   : > { %v914_v28 = vpack.c.bf16 %v672_v25, %v671_v24  ;;  %v655_v29 = vadd.f32 %v654_v27, %v505_v47  ;;  %v673_v31 = vmax.f32 %v653_v26, 0.0 }
 0x211   : > { %v656_v30 = vpop.f32.mrf.mxu1 }
 0x212   : > { %730 = vst [vmem:[%s1433_s8 + $0x28] sm:$0xff] %v914_v28  ;;  %v674_v32 = vmax.f32 %v655_v29, 0.0  ;;  %v657_v33 = vadd.f32 %v656_v30, %v501_v46 }
 0x213   : > { %v658_v34 = vpop.f32.mrf.mxu1 }
 0x214   : > { %v915_v35 = vpack.c.bf16 %v674_v32, %v673_v31  ;;  %v659_v36 = vadd.f32 %v658_v34, %v505_v47  ;;  %v675_v37 = vmax.f32 %v657_v33, 0.0 }
 0x216   : > { %731 = vst [vmem:[%s1433_s8 + $0x30] sm:$0xff] %v915_v35  ;;  %v676_v38 = vmax.f32 %v659_v36, 0.0 }
 0x218   : > { %v916_v39 = vpack.c.bf16 %v676_v38, %v675_v37 }
 0x21a   : > { %732 = vst [vmem:[%s1433_s8 + $0x38] sm:$0xff] %v916_v39 }
 0x21b   : > { %1174 = shalt.err (!%p1171_p2)
}
 0x21c   : > { %s1175_s13 = scalar_lea.hbm %s1449_s29, 1024  ;;  %s1179_s25 = scalar_lea.hbm %s1502_s4, 2048 }
 0x21d   : > { %p1176_p9 = scmp.ne.s32.totalorder %s1449_s29, %s1175_s13  ;;  %p1180_p0 = scmp.lt.s32.totalorder %s1449_s29, %s1502_s4 }
 0x21e   : > { %p1181_p7 = scmp.lt.s32.totalorder %s1179_s25, %s1175_s13 }
 0x21f   : > { %p1177_p12 = pnand %p1176_p9, %p1381_p3 }
 0x220   : > { %p1182_p5 = por %p1181_p7, %p1180_p0 }
 0x221   : > { %p1178_p13 = pneg %p1177_p12 }
 0x223   : > { %p1183_p1 = pnand %p1182_p5, %p1178_p13 }
 0x225   : > { %1186 = shalt.err (!%p1183_p1)
}
 0x226   : > { %s1256_s22 = smov 128   ;;  %s1257_s24 = smov 8  }
 0x227   : > { %965 = dma.vmem_to_hbm [thread:$0]  (%p1381_p3), %s1443_s14, 1024, %s1449_s29, %s734_s10, %s1256_s22, %s1256_s22, %s1257_s24  }
 0x228 PF: > { %s763_s30 = sand.u32 1, %s1225_s15   ;;  %p1515_p4 = scmp.ne.s32.totalorder %s1508_s26, 0 }
 0x229   : > { %p1516_p6 = scmp.ge.s32.totalorder %s1245_s20, 2  ;;  %s764_s6 = scalar_lea.sflag [#allocation5], %s763_s30 }
 0x22b   : > { %p979_p8 = pnand %p1516_p6, %p1515_p4 }
 0x22d   : > { %p980_p10 = pneg %p979_p8 }
 0x22f   : > { %1220 = dma.done.wait (%p980_p10), %s764_s6, 1024  }
 0x230   : > { %1222 = vsyncadd (%p980_p10), %s764_s6, 4294966272  ;;  %s21_s20 = sadd.s32 1, %s1245_s20   ;;  %s1517_s15 = smov %s1229_s16 }
 0x231   : > { %p18_p11 = scmp.ge.s32.totalorder %s21_s20, 4   ;;  %s1518_s16 = smov %s1233_s17 }
 0x232   : > { %s1519_s17 = smov %s1390_s11  ;;  %s1520_s18 = smov %s1241_s19 }
 0x233   : > { %s1521_s19 = smov %s1523_s28  ;;  %20 = sbr.rel (!%p18_p11) target bundleno = 7 (0x7), region = 98 }
 0x238   :  { %769 = vsyncpa [#allocation4], 1 }
 0x239   :  { %771 = vsyncpa [#allocation4 + $0x1], 1 }
 0x23a   :  { %772 = vsyncpa [#allocation7], 1 }
 0x23b   :  { %773 = vsyncpa [#allocation5], 1 }
 0x23c   :  { %775 = vsyncpa [#allocation5 + $0x1], 1 }

</bundles_post_ra>
